<compile_context>
chip_gen: v7x
topology: tpu7x:2x2x1
jax: 0.10.0
libtpu: 0.0.40
codegen_flags: <defaults>
</compile_context>

<pallas_src>
import jax
import jax.numpy as jnp
from jax.experimental import pallas as pl
from jax.experimental.pallas import tpu as pltpu


def _round_up(x, m):
    return ((x + m - 1) // m) * m


def _device_kind():
    try:
        d = jax.devices()[0]
        if getattr(d, "platform", "") == "tpu":
            return d.device_kind.lower()
    except Exception:
        pass
    return ""


def _vmem_capacity_bytes():
    """Physical VMEM per core; conservative (v7x-sized) fallback."""
    try:
        info = pltpu.get_tpu_info()
        cap = int(getattr(info, "vmem_capacity_bytes", 0))
        if cap > 0:
            return cap
    except Exception:
        pass
    return 64 << 20


def _tile_i_candidates(I):
    """Descending tile sizes for the intermediate dim (multiples of 128)."""
    if I % 128 == 0:
        base = I // 128
        return [128 * k for k in range(base, 0, -1) if base % k == 0]
    return [I]


# --------------------------------------------------------------------------- #
# Kernel
# --------------------------------------------------------------------------- #
def _llama_mlp_kernel(x_ref, wgu_ref, wd_ref, o_ref, acc_ref):
    """Grid step (i, j): token tile i  x  intermediate tile j.

    x_ref  : (tm, H)          token tile, resident across j
    wgu_ref: (1, 2, H, ti)    fused [gate_j ; up_j] weight tile (contiguous DMA)
    wd_ref : (1, ti, H)       down_proj weight tile
    o_ref  : (tm, H)          output tile, resident across j
    acc_ref: (tm, H) f32      VMEM accumulator scratch
    """
    j = pl.program_id(1)

    @pl.when(j == 0)
    def _():
        acc_ref[...] = jnp.zeros_like(acc_ref)

    x = x_ref[...]

    # Gate projection + SiLU.  Two separate dots against the gate / up halves
    # (instead of one (tm, 2*ti) dot that is then value-sliced) halve the peak
    # live f32 temporary to (tm, ti).
    g = jnp.dot(x, wgu_ref[0, 0], preferred_element_type=jnp.float32)
    act = g * jax.nn.sigmoid(g)

    # Up projection and elementwise gate (f32 epilogue).
    u = jnp.dot(x, wgu_ref[0, 1], preferred_element_type=jnp.float32)
    inter = (act * u).astype(x.dtype)

    # Partial down projection for this intermediate tile, accumulated in f32.
    acc_ref[...] += jnp.dot(inter, wd_ref[0], preferred_element_type=jnp.float32)

    @pl.when(j == pl.num_programs(1) - 1)
    def _():
        o_ref[...] = acc_ref[...].astype(o_ref.dtype)


# --------------------------------------------------------------------------- #
# Tile selection (generation- and VMEM-aware)
# --------------------------------------------------------------------------- #
def choose_tiles(M, H, I, x_dtype, w_dtype):
    """Pick (tile_m, tile_i, weight_buffers) for the current TPU generation."""
    x_isz = jnp.dtype(x_dtype).itemsize
    w_isz = jnp.dtype(w_dtype).itemsize
    kind = _device_kind()
    vmem_cap = _vmem_capacity_bytes()
    budget = vmem_cap * 3 // 4          # leave headroom for compiler scratch

    if ("v5e" in kind) or ("v5 lite" in kind) or ("v5lite" in kind):
        tm_cap = 256                    # v5e is compute-bound already at ~256
    elif "v6" in kind:
        tm_cap = 1024                   # 128 MiB VMEM, roofline wants tm >~ 700
    else:
        tm_cap = 512                    # v7x / unknown: 64 MiB VMEM per TC

    multi_tc = any(t in kind for t in ("v7", "v4", "v5p"))
    ti_cands = _tile_i_candidates(I)

    def fits(tm, ti, wbuf):
        fixed = 4 * tm * H * x_isz + tm * H * 4           # x/out (2-buf) + f32 acc
        weights = wbuf * (H * 2 * ti + ti * H) * w_isz    # gate/up + down tiles
        internal = tm * ti * (8 + x_isz)                  # f32 act + u + cast temp
        return fixed + weights + internal <= budget

    tile_m = min(tm_cap, max(8, _round_up(M, 8)))

    # Give the second TensorCore work when there would be only one token tile.
    if multi_tc and M > 8 and (M + tile_m - 1) // tile_m <= 1:
        tile_m = max(8, _round_up(_round_up(M, 8) // 2, 8))

    # Shrink the token tile until at least the smallest I tile fits the budget.
    while tile_m > 8 and not any(fits(tile_m, ti, 2) for ti in ti_cands):
        tile_m = max(8, _round_up(tile_m // 2, 8))

    tile_i = next((ti for ti in ti_cands if fits(tile_m, ti, 2)), ti_cands[-1])

    # Triple-buffer the streamed weight tiles only when useful and affordable.
    n_i_tiles = I // tile_i
    weight_buffers = 3 if (n_i_tiles >= 3 and fits(tile_m, tile_i, 3)) else 2
    return tile_m, tile_i, weight_buffers


# --------------------------------------------------------------------------- #
# One-time weight preparation (model-load time, NOT per forward call)
# --------------------------------------------------------------------------- #
def prepare_llama_mlp_weights(w_gate, w_up, w_down, *, tile_i):
    """Inputs use the PyTorch nn.Linear layout:
         w_gate, w_up : [I, H]   (out_features, in_features)
         w_down       : [H, I]

    Returns:
      wgu : [n_tiles, 2, H, tile_i]  -- per I-tile fused [gate | up] slab,
            fully contiguous in HBM (one contiguous DMA per grid step).
      wdt : [n_tiles, tile_i, H]     -- down_proj transposed, tiled over I.
    """
    I, H = w_gate.shape
    assert w_up.shape == (I, H) and w_down.shape == (H, I)
    assert I % tile_i == 0, "intermediate_size must be divisible by tile_i"
    n = I // tile_i

    wg_t = jnp.transpose(w_gate, (1, 0)).reshape(H, n, tile_i)   # (H, n, ti)
    wu_t = jnp.transpose(w_up, (1, 0)).reshape(H, n, tile_i)     # (H, n, ti)
    wgu = jnp.stack([wg_t, wu_t], axis=0)                        # (2, H, n, ti)
    wgu = jnp.transpose(wgu, (2, 0, 1, 3))                       # (n, 2, H, ti)

    wdt = jnp.transpose(w_down, (1, 0)).reshape(n, tile_i, H)    # (n, ti, H)
    return wgu, wdt


# --------------------------------------------------------------------------- #
# Forward
# --------------------------------------------------------------------------- #
def llama_mlp_forward(x, wgu, wdt, *, tile_m, weight_buffers=2):
    """x: [B, S, H]; wgu: [n, 2, H, ti]; wdt: [n, ti, H] (prepared weights)."""
    B, S, H = x.shape
    assert wgu.ndim == 4 and wgu.shape[1] == 2 and wgu.shape[2] == H
    n_tiles, _, _, tile_i = wgu.shape
    assert wdt.shape == (n_tiles, tile_i, H)

    M = B * S
    x2d = x.reshape(M, H)
    Mp = _round_up(M, tile_m)
    if Mp != M:
        # TODO(synk): a masked tail tile would avoid the padded-row compute.
        x2d = jnp.pad(x2d, ((0, Mp - M), (0, 0)))

    grid = (Mp // tile_m, n_tiles)

    # VMEM accounting (weight tiles, double-buffered x/out, f32 accumulator,
    # and the in-kernel f32 activation temporaries), capped below physical VMEM.
    x_isz = jnp.dtype(x.dtype).itemsize
    w_isz = jnp.dtype(wgu.dtype).itemsize
    est = (weight_buffers * (H * 2 * tile_i + tile_i * H) * w_isz
           + 4 * tile_m * H * x_isz
           + tile_m * H * 4
           + tile_m * tile_i * (8 + x_isz))
    vmem_cap = _vmem_capacity_bytes()
    vmem_limit = int(min(vmem_cap * 9 // 10, max(32 << 20, est + (4 << 20))))

    if weight_buffers > 2:
        wgu_spec = pl.BlockSpec((1, 2, H, tile_i), lambda i, j: (j, 0, 0, 0),
                                pipeline_mode=pl.Buffered(weight_buffers))
        wdt_spec = pl.BlockSpec((1, tile_i, H), lambda i, j: (j, 0, 0),
                                pipeline_mode=pl.Buffered(weight_buffers))
    else:
        wgu_spec = pl.BlockSpec((1, 2, H, tile_i), lambda i, j: (j, 0, 0, 0))
        wdt_spec = pl.BlockSpec((1, tile_i, H), lambda i, j: (j, 0, 0))

    out2d = pl.pallas_call(
        _llama_mlp_kernel,
        out_shape=jax.ShapeDtypeStruct((Mp, H), x.dtype),
        grid_spec=pltpu.PrefetchScalarGridSpec(
            num_scalar_prefetch=0,
            grid=grid,
            in_specs=[
                pl.BlockSpec((tile_m, H), lambda i, j: (i, 0)),   # token tile
                wgu_spec,                                         # [gate_j ; up_j]
                wdt_spec,                                         # down_j
            ],
            out_specs=pl.BlockSpec((tile_m, H), lambda i, j: (i, 0)),
            scratch_shapes=[pltpu.VMEM((tile_m, H), jnp.float32)],
        ),
        compiler_params=pltpu.CompilerParams(
            dimension_semantics=("parallel", "arbitrary"),
            vmem_limit_bytes=vmem_limit),
    )(x2d, wgu, wdt)

    if Mp != M:
        out2d = out2d[:M]
    return out2d.reshape(B, S, H)


# --------------------------------------------------------------------------- #
# Reference + demo
# --------------------------------------------------------------------------- #
def _reference_mlp(x, w_gate, w_up, w_down):
    g = jnp.einsum("bsh,ih->bsi", x, w_gate)
    u = jnp.einsum("bsh,ih->bsi", x, w_up)
    inter = jax.nn.silu(g) * u
    return jnp.einsum("bsi,hi->bsh", inter, w_down)


if __name__ == "__main__":
    # Small config consistent with LlamaMLP (pretraining_tp == 1, hidden_act == "silu").
    B, S = 2, 8
    hidden_size = 128
    intermediate_size = 256

    key = jax.random.PRNGKey(0)
    kx, kg, ku, kd, kx2 = jax.random.split(key, 5)

    x = jax.random.normal(kx, (B, S, hidden_size), dtype=jnp.float32)
    # PyTorch nn.Linear layout: [out_features, in_features]
    w_gate = jax.random.normal(kg, (intermediate_size, hidden_size), jnp.float32) * 0.02
    w_up   = jax.random.normal(ku, (intermediate_size, hidden_size), jnp.float32) * 0.02
    w_down = jax.random.normal(kd, (hidden_size, intermediate_size), jnp.float32) * 0.02

    ref = _reference_mlp(x, w_gate, w_up, w_down)

    # --- Path 1: auto tiling, f32 end-to-end ---------------------------------
    tile_m, tile_i, wbuf = choose_tiles(B * S, hidden_size, intermediate_size,
                                        x.dtype, w_gate.dtype)
    wgu, wdt = prepare_llama_mlp_weights(w_gate, w_up, w_down, tile_i=tile_i)
    out = llama_mlp_forward(x, wgu, wdt, tile_m=tile_m, weight_buffers=wbuf)
    out = jax.block_until_ready(out)
    assert out.shape == (B, S, hidden_size)
    assert jnp.allclose(out, ref, atol=1e-5, rtol=1e-5), "f32 mismatch vs reference"

    # --- Path 2: bf16 weights/activations with explicit small tiles so the
    #     multi-tile reduction over the intermediate dim is exercised ---------
    S2 = 16
    x2 = jax.random.normal(kx2, (B, S2, hidden_size), dtype=jnp.bfloat16)
    wg_b = w_gate.astype(jnp.bfloat16)
    wu_b = w_up.astype(jnp.bfloat16)
    wd_b = w_down.astype(jnp.bfloat16)
    wgu_b, wdt_b = prepare_llama_mlp_weights(wg_b, wu_b, wd_b, tile_i=128)
    out_b = llama_mlp_forward(x2, wgu_b, wdt_b, tile_m=16, weight_buffers=2)
    out_b = jax.block_until_ready(out_b)
    ref_b = _reference_mlp(x2.astype(jnp.float32),
                           wg_b.astype(jnp.float32),
                           wu_b.astype(jnp.float32),
                           wd_b.astype(jnp.float32))
    assert out_b.shape == (B, S2, hidden_size)
    assert jnp.allclose(out_b.astype(jnp.float32), ref_b, atol=3e-2, rtol=3e-2), \
        "bf16 mismatch vs reference"

    print("KERNEL_OK")
</pallas_src>

<mosaic_0001>
module attributes {stable_mosaic.version = 11 : i64} {
  func.func @_llama_mlp_kernel(%arg0: i32, %arg1: i32, %arg2: memref<16x128xf32, #tpu.memory_space<vmem>>, %arg3: memref<1x2x128x256xf32, #tpu.memory_space<vmem>>, %arg4: memref<1x256x128xf32, #tpu.memory_space<vmem>>, %arg5: memref<16x128xf32, #tpu.memory_space<vmem>>, %arg6: memref<16x128xf32, #tpu.memory_space<vmem>>) attributes {dimension_semantics = [#tpu.dimension_semantics<parallel>, #tpu.dimension_semantics<arbitrary>], iteration_bounds = array<i64: 1, 1>, scalar_prefetch = 0 : i64, scratch_operands = 1 : i64, tpu.core_type = #tpu.core_type<tc>, window_params = [{transform_indices = @transform_0, window_bounds = array<i64: 16, 128>}, {transform_indices = @transform_1, window_bounds = array<i64: 1, 2, 128, 256>}, {transform_indices = @transform_2, window_bounds = array<i64: 1, 256, 128>}, {transform_indices = @transform_3, window_bounds = array<i64: 16, 128>}]} {
    %c0_i32 = arith.constant 0 : i32
    %0 = arith.cmpi eq, %arg1, %c0_i32 : i32
    %1 = arith.extui %0 : i1 to i32
    %c0_i32_0 = arith.constant 0 : i32
    %2 = arith.cmpi ne, %1, %c0_i32_0 : i32
    scf.if %2 {
      %cst_21 = arith.constant 0.000000e+00 : f32
      %26 = vector.broadcast %cst_21 : f32 to vector<16x128xf32>
      %c0_22 = arith.constant 0 : index
      %c0_23 = arith.constant 0 : index
      %27 = vector.load %arg6[%c0_22, %c0_23] : memref<16x128xf32, #tpu.memory_space<vmem>>, vector<16x128xf32>
      tpu.vector_store %arg6[%c0_22, %c0_23], %26 {strides = array<i32>} : memref<16x128xf32, #tpu.memory_space<vmem>>, vector<16x128xf32>,
    } else {
    }
    %c0 = arith.constant 0 : index
    %c0_1 = arith.constant 0 : index
    %3 = vector.load %arg2[%c0, %c0_1] : memref<16x128xf32, #tpu.memory_space<vmem>>, vector<16x128xf32>
    %c0_2 = arith.constant 0 : index
    %c0_3 = arith.constant 0 : index
    %c0_4 = arith.constant 0 : index
    %c0_5 = arith.constant 0 : index
    %4 = vector.load %arg3[%c0_2, %c0_3, %c0_4, %c0_5] : memref<1x2x128x256xf32, #tpu.memory_space<vmem>>, vector<1x1x128x256xf32>
    %5 = vector.shape_cast %4 : vector<1x1x128x256xf32> to vector<128x256xf32>
    %cst = arith.constant dense<0.000000e+00> : vector<16x256xf32>
    %6 = tpu.matmul %3, %5, %cst {dimension_numbers = #tpu.dot_dimension_numbers<[1], [0], [0], [1], [0, 0, 1, 1], [], []>} : vector<16x128xf32>, vector<128x256xf32>, vector<16x256xf32> -> vector<16x256xf32>
    %7 = arith.negf %6 : vector<16x256xf32>
    %8 = math.exp %7 : vector<16x256xf32>
    %cst_6 = arith.constant 1.000000e+00 : f32
    %9 = vector.broadcast %cst_6 : f32 to vector<16x256xf32>
    %10 = arith.addf %9, %8 : vector<16x256xf32>
    %11 = arith.divf %9, %10 : vector<16x256xf32>
    %12 = arith.mulf %6, %11 : vector<16x256xf32>
    %c0_7 = arith.constant 0 : index
    %c1 = arith.constant 1 : index
    %c0_8 = arith.constant 0 : index
    %c0_9 = arith.constant 0 : index
    %13 = vector.load %arg3[%c0_7, %c1, %c0_8, %c0_9] : memref<1x2x128x256xf32, #tpu.memory_space<vmem>>, vector<1x1x128x256xf32>
    %14 = vector.shape_cast %13 : vector<1x1x128x256xf32> to vector<128x256xf32>
    %cst_10 = arith.constant dense<0.000000e+00> : vector<16x256xf32>
    %15 = tpu.matmul %3, %14, %cst_10 {dimension_numbers = #tpu.dot_dimension_numbers<[1], [0], [0], [1], [0, 0, 1, 1], [], []>} : vector<16x128xf32>, vector<128x256xf32>, vector<16x256xf32> -> vector<16x256xf32>
    %16 = arith.mulf %12, %15 : vector<16x256xf32>
    %c0_11 = arith.constant 0 : index
    %c0_12 = arith.constant 0 : index
    %17 = vector.load %arg6[%c0_11, %c0_12] : memref<16x128xf32, #tpu.memory_space<vmem>>, vector<16x128xf32>
    %c0_13 = arith.constant 0 : index
    %c0_14 = arith.constant 0 : index
    %c0_15 = arith.constant 0 : index
    %18 = vector.load %arg4[%c0_13, %c0_14, %c0_15] : memref<1x256x128xf32, #tpu.memory_space<vmem>>, vector<1x256x128xf32>
    %19 = vector.shape_cast %18 : vector<1x256x128xf32> to vector<256x128xf32>
    %cst_16 = arith.constant dense<0.000000e+00> : vector<16x128xf32>
    %20 = tpu.matmul %16, %19, %cst_16 {dimension_numbers = #tpu.dot_dimension_numbers<[1], [0], [0], [1], [0, 0, 1, 1], [], []>} : vector<16x256xf32>, vector<256x128xf32>, vector<16x128xf32> -> vector<16x128xf32>
    %21 = arith.addf %17, %20 : vector<16x128xf32>
    %c0_17 = arith.constant 0 : index
    %c0_18 = arith.constant 0 : index
    %22 = vector.load %arg6[%c0_17, %c0_18] : memref<16x128xf32, #tpu.memory_space<vmem>>, vector<16x128xf32>
    tpu.vector_store %arg6[%c0_17, %c0_18], %21 {strides = array<i32>} : memref<16x128xf32, #tpu.memory_space<vmem>>, vector<16x128xf32>,
    %c0_i32_19 = arith.constant 0 : i32
    %23 = arith.cmpi eq, %arg1, %c0_i32_19 : i32
    %24 = arith.extui %23 : i1 to i32
    %c0_i32_20 = arith.constant 0 : i32
    %25 = arith.cmpi ne, %24, %c0_i32_20 : i32
    scf.if %25 {
      %c0_21 = arith.constant 0 : index
      %c0_22 = arith.constant 0 : index
      %26 = vector.load %arg6[%c0_21, %c0_22] : memref<16x128xf32, #tpu.memory_space<vmem>>, vector<16x128xf32>
      %c0_23 = arith.constant 0 : index
      %c0_24 = arith.constant 0 : index
      %27 = vector.load %arg5[%c0_23, %c0_24] : memref<16x128xf32, #tpu.memory_space<vmem>>, vector<16x128xf32>
      tpu.vector_store %arg5[%c0_23, %c0_24], %26 {strides = array<i32>} : memref<16x128xf32, #tpu.memory_space<vmem>>, vector<16x128xf32>,
    } else {
    }
    return
  }
  func.func @transform_0(%arg0: i32, %arg1: i32) -> (i32, i32) {
    %c0_i32 = arith.constant 0 : i32
    %c0_i32_0 = arith.constant 0 : i32
    return %arg0, %c0_i32 : i32, i32
  }
  func.func @transform_1(%arg0: i32, %arg1: i32) -> (i32, i32, i32, i32) {
    %c0_i32 = arith.constant 0 : i32
    %c0_i32_0 = arith.constant 0 : i32
    %c0_i32_1 = arith.constant 0 : i32
    %c0_i32_2 = arith.constant 0 : i32
    return %arg1, %c0_i32, %c0_i32_0, %c0_i32_1 : i32, i32, i32, i32
  }
  func.func @transform_2(%arg0: i32, %arg1: i32) -> (i32, i32, i32) {
    %c0_i32 = arith.constant 0 : i32
    %c0_i32_0 = arith.constant 0 : i32
    %c0_i32_1 = arith.constant 0 : i32
    return %arg1, %c0_i32, %c0_i32_0 : i32, i32, i32
  }
  func.func @transform_3(%arg0: i32, %arg1: i32) -> (i32, i32) {
    %c0_i32 = arith.constant 0 : i32
    %c0_i32_0 = arith.constant 0 : i32
    return %arg0, %c0_i32 : i32, i32
  }
}

</mosaic_0001>

<bundles_post_ra>
// kernel: tpu_custom_call.1
= control target key start
LH: loop header
LB: loop body
LE: loop exit
PB: predicated region body
PF: predicated region fallthrough
CT: control target
= control target key end

     0   :  { %8 = vsyncpa [#allocation4], 0  ;;  %s816_s0 = inlined_call_operand.hbm [shape: f32[16,128], index: 0, kind: input, shape index: {}]   ;;  %s817_s1 = inlined_call_operand.hbm [shape: f32[1,2,128,256], index: 1, kind: input, shape index: {}]   ;;  %s818_s2 = inlined_call_operand.hbm [shape: f32[1,256,128], index: 2, kind: input, shape index: {}]   ;;  %s819_s3 = inlined_call_operand.hbm [shape: f32[16,128], index: 3, kind: output, shape index: {}]  }
   0x1   :  { %9 = vsyncpa [#allocation7], 0 }
   0x2   :  { %10 = vsyncpa [#allocation5], 0  ;;  %s726_s12 = smov [#allocation6]   ;;  %s632_s16 = scalar_lea.hbm %s817_s1, 8192 }
   0x3   :  { %s28_s13 = sshll.u32 %s726_s12, 4  ;;  %p633_p0 = scmp.ne.s32.totalorder %s817_s1, %s632_s16  ;;  %s29_s13 = int_to_ptr.vmem [resolvable:$true] %s28_s13 }
   0x4   :  { %p636_p1 = scmp.lt.u32.totalorder %s632_s16, %s817_s1 }
   0x6   :  { %p638_p2 = pnand %p636_p1, %p633_p0 }
   0x8   :  { %641 = shalt.err (!%p638_p2)
}
   0x9   :  { %s642_s21 = scalar_lea.vmem %s29_s13, 8192  ;;  %p647_p4 = scmp.lt.s32.totalorder %s29_s13, %s29_s13 }
   0xa   :  { %p643_p3 = scmp.ne.s32.totalorder %s29_s13, %s642_s21  ;;  %p648_p5 = scmp.lt.s32.totalorder %s642_s21, %s642_s21 }
   0xc   :  { %p649_p6 = por %p648_p5, %p647_p4 }
   0xe   :  { %p650_p7 = pnand %p649_p6, %p643_p3 }
  0x10   :  { %653 = shalt.err (!%p650_p7)
}
  0x11   :  { %s727_s22 = smov 256   ;;  %s728_s23 = smov 16  }
  0x12   :  { %34 = dma.hbm_to_vmem [thread:$0]  %s817_s1, 8192, %s29_s13, [#allocation7], %s727_s22, %s727_s22, %s728_s23  }
  0x13   :  { %s729_s26 = smov [#allocation3]   ;;  %s654_s30 = scalar_lea.hbm %s816_s0, 256 }
  0x14   :  { %s16_s27 = sshll.u32 %s729_s26, 4  ;;  %p655_p8 = scmp.ne.s32.totalorder %s816_s0, %s654_s30  ;;  %s17_s27 = int_to_ptr.vmem [resolvable:$true] %s16_s27 }
  0x15   :  { %p658_p9 = scmp.lt.u32.totalorder %s654_s30, %s816_s0 }
  0x17   :  { %p660_p10 = pnand %p658_p9, %p655_p8 }
  0x19   :  { %663 = shalt.err (!%p660_p10)
}
  0x1a   :  { %s664_s8 = scalar_lea.vmem %s17_s27, 256  ;;  %p669_p12 = scmp.lt.s32.totalorder %s17_s27, %s17_s27 }
  0x1b   :  { %p665_p11 = scmp.ne.s32.totalorder %s17_s27, %s664_s8  ;;  %p670_p13 = scmp.lt.s32.totalorder %s664_s8, %s664_s8 }
  0x1d   :  { %p671_p0 = por %p670_p13, %p669_p12 }
  0x1f   :  { %p672_p1 = pnand %p671_p0, %p665_p11 }
  0x21   :  { %675 = shalt.err (!%p672_p1)
}
  0x22   :  { %s730_s1 = smov 128   ;;  %s731_s9 = smov 8  }
  0x23   :  { %22 = dma.hbm_to_vmem [thread:$0]  %s816_s0, 256, %s17_s27, [#allocation4], %s730_s1, %s730_s1, %s731_s9  }
  0x24   :  { %s732_s12 = smov [#allocation8]   ;;  %s676_s16 = scalar_lea.hbm %s818_s2, 4096 }
  0x25   :  { %s40_s13 = sshll.u32 %s732_s12, 4  ;;  %p677_p2 = scmp.ne.s32.totalorder %s818_s2, %s676_s16  ;;  %s41_s13 = int_to_ptr.vmem [resolvable:$true] %s40_s13 }
  0x26   :  { %p680_p3 = scmp.lt.u32.totalorder %s676_s16, %s818_s2 }
  0x28   :  { %p682_p4 = pnand %p680_p3, %p677_p2 }
  0x2a   :  { %685 = shalt.err (!%p682_p4)
}
  0x2b   :  { %s686_s21 = scalar_lea.vmem %s41_s13, 4096  ;;  %p691_p6 = scmp.lt.s32.totalorder %s41_s13, %s41_s13 }
  0x2c   :  { %p687_p5 = scmp.ne.s32.totalorder %s41_s13, %s686_s21  ;;  %p692_p7 = scmp.lt.s32.totalorder %s686_s21, %s686_s21 }
  0x2e   :  { %p693_p8 = por %p692_p7, %p691_p6 }
  0x30   :  { %p694_p9 = pnand %p693_p8, %p687_p5 }
  0x32   :  { %697 = shalt.err (!%p694_p9)
}
  0x33   :  { %46 = dma.hbm_to_vmem [thread:$0]  %s818_s2, 4096, %s41_s13, [#allocation7], %s730_s1, %s730_s1, %s731_s9  }
  0x34   :  { %720 = dma.done.wait [#allocation4], 256  }
  0x35   :  { %721 = vsyncadd [#allocation4], 4294967040 }
  0x36   :  { %722 = dma.done.wait [#allocation7], 12288  }
  0x37   :  { %723 = vsyncadd [#allocation7], 4294955008  ;;  %v733_v0 = vmov 0.0   ;;  %v65_v1 = vld [vmem:[#allocation6 + $0x8] sm:$0xff]  ;;  %v67_v2 = vld [vmem:[#allocation6 + $0x18] sm:$0xff]  ;;  %s734_s2 = smov [#allocation9]  }
  0x38   :  { %160 = vmatprep.mubr.f32.mxu0 %v733_v0  ;;  %298 = vmatprep.mubr.f32.mxu1 %v733_v0  ;;  %v64_v3 = vld [vmem:[#allocation6] sm:$0xff]  ;;  %v495_v4 = vpack.c.bf16 %v67_v2, %v65_v1  ;;  %v66_v5 = vld [vmem:[#allocation6 + $0x10] sm:$0xff]  ;;  %v69_v6 = vld [vmem:[#allocation6 + $0x28] sm:$0xff]  ;;  %s440_s23 = sshll.u32 %s734_s2, 4  ;;  %s441_s23 = int_to_ptr.vmem [resolvable:$true] %s440_s23 }
  0x39   :  { %v71_v7 = vld [vmem:[#allocation6 + $0x38] sm:$0xff]  ;;  %v497_v8 = vpack.c.bf16 %v66_v5, %v64_v3  ;;  %v68_v10 = vld [vmem:[#allocation6 + $0x20] sm:$0xff]  ;;  %v70_v11 = vld [vmem:[#allocation6 + $0x30] sm:$0xff]  ;;  %s698_s24 = scalar_lea.vmem %s441_s23, 256  ;;  %p703_p11 = scmp.lt.s32.totalorder %s441_s23, %s441_s23 }
  0x3a   :  { %v499_v9 = vpack.c.bf16 %v71_v7, %v69_v6  ;;  %v73_v12 = vld [vmem:[#allocation6 + $0x48] sm:$0xff]  ;;  %496 = vmatprep.subr.bf16.mxu0 %v495_v4  ;;  %v75_v13 = vld [vmem:[#allocation6 + $0x58] sm:$0xff]  ;;  %v501_v14 = vpack.c.bf16 %v70_v11, %v68_v10  ;;  %v72_v16 = vld [vmem:[#allocation6 + $0x40] sm:$0xff]  ;;  %p699_p10 = scmp.ne.s32.totalorder %s441_s23, %s698_s24  ;;  %p704_p12 = scmp.lt.s32.totalorder %s698_s24, %s698_s24 }
  0x3b   :  { %498 = vmatpush1.bf16.msra.mxu0 %v497_v8  ;;  %v503_v15 = vpack.c.bf16 %v75_v13, %v73_v12  ;;  %v74_v17 = vld [vmem:[#allocation6 + $0x50] sm:$0xff]  ;;  %v77_v18 = vld [vmem:[#allocation6 + $0x68] sm:$0xff]  ;;  %v79_v19 = vld [vmem:[#allocation6 + $0x78] sm:$0xff] }
  0x3c   :  { %500 = vmatprep.subr.bf16.mxu0 %v499_v9  ;;  %v505_v20 = vpack.c.bf16 %v74_v17, %v72_v16  ;;  %v76_v21 = vld [vmem:[#allocation6 + $0x60] sm:$0xff]  ;;  %v507_v22 = vpack.c.bf16 %v79_v19, %v77_v18  ;;  %v78_v23 = vld [vmem:[#allocation6 + $0x70] sm:$0xff]  ;;  %v203_v24 = vld [vmem:[#allocation6 + $0x108] sm:$0xff]  ;;  %p705_p13 = por %p704_p12, %p703_p11 }
  0x3d   :  { %v205_v25 = vld [vmem:[#allocation6 + $0x118] sm:$0xff]  ;;  %v81_v26 = vld [vmem:[#allocation6 + $0x88] sm:$0xff]  ;;  %v202_v29 = vld [vmem:[#allocation6 + $0x100] sm:$0xff]  ;;  %v509_v32 = vpack.c.bf16 %v78_v23, %v76_v21 }
  0x3e   :  { %v83_v27 = vld [vmem:[#allocation6 + $0x98] sm:$0xff]  ;;  %v527_v28 = vpack.c.bf16 %v205_v25, %v203_v24  ;;  %v80_v30 = vld [vmem:[#allocation6 + $0x80] sm:$0xff]  ;;  %v204_v31 = vld [vmem:[#allocation6 + $0x110] sm:$0xff]  ;;  %p706_p0 = pnand %p705_p13, %p699_p10 }
  0x3f   :  { %502 = vmatpush1.bf16.msra.mxu0 %v501_v14  ;;  %v82_v33 = vld [vmem:[#allocation6 + $0x90] sm:$0xff]  ;;  %v529_v34 = vpack.c.bf16 %v204_v31, %v202_v29  ;;  %v207_v35 = vld [vmem:[#allocation6 + $0x128] sm:$0xff]  ;;  %v209_v36 = vld [vmem:[#allocation6 + $0x138] sm:$0xff]  ;;  %v511_v37 = vpack.c.bf16 %v83_v27, %v81_v26 }
  0x40   :  { %504 = vmatprep.subr.bf16.mxu0 %v503_v15  ;;  %528 = vmatprep.subr.bf16.mxu1 %v527_v28  ;;  %v531_v38 = vpack.c.bf16 %v209_v36, %v207_v35  ;;  %v206_v39 = vld [vmem:[#allocation6 + $0x120] sm:$0xff]  ;;  %v208_v40 = vld [vmem:[#allocation6 + $0x130] sm:$0xff]  ;;  %v211_v41 = vld [vmem:[#allocation6 + $0x148] sm:$0xff]  ;;  %v513_v49 = vpack.c.bf16 %v82_v33, %v80_v30 }
  0x41   :  { %v85_v42 = vld [vmem:[#allocation6 + $0xa8] sm:$0xff]  ;;  %v87_v43 = vld [vmem:[#allocation6 + $0xb8] sm:$0xff]  ;;  %530 = vmatpush1.bf16.msra.mxu1 %v529_v34  ;;  %v533_v44 = vpack.c.bf16 %v208_v40, %v206_v39  ;;  %v210_v47 = vld [vmem:[#allocation6 + $0x140] sm:$0xff] }
  0x42   :  { %v213_v45 = vld [vmem:[#allocation6 + $0x158] sm:$0xff]  ;;  %532 = vmatprep.subr.bf16.mxu1 %v531_v38  ;;  %v212_v48 = vld [vmem:[#allocation6 + $0x150] sm:$0xff]  ;;  %v215_v50 = vld [vmem:[#allocation6 + $0x168] sm:$0xff]  ;;  %v515_v52 = vpack.c.bf16 %v87_v43, %v85_v42 }
  0x43   :  { %506 = vmatpush1.bf16.msra.mxu0 %v505_v20  ;;  %v535_v46 = vpack.c.bf16 %v213_v45, %v211_v41  ;;  %v217_v51 = vld [vmem:[#allocation6 + $0x178] sm:$0xff]  ;;  %v84_v53 = vld [vmem:[#allocation6 + $0xa0] sm:$0xff]  ;;  %v86_v54 = vld [vmem:[#allocation6 + $0xb0] sm:$0xff]  ;;  %v537_v57 = vpack.c.bf16 %v212_v48, %v210_v47 }
  0x44   :  { %508 = vmatprep.subr.bf16.mxu0 %v507_v22  ;;  %v89_v55 = vld [vmem:[#allocation6 + $0xc8] sm:$0xff]  ;;  %v91_v56 = vld [vmem:[#allocation6 + $0xd8] sm:$0xff]  ;;  %v539_v58 = vpack.c.bf16 %v217_v51, %v215_v50  ;;  %v214_v59 = vld [vmem:[#allocation6 + $0x160] sm:$0xff]  ;;  %v517_v61 = vpack.c.bf16 %v86_v54, %v84_v53 }
  0x45   :  { %534 = vmatpush1.bf16.msra.mxu1 %v533_v44  ;;  %v216_v60 = vld [vmem:[#allocation6 + $0x170] sm:$0xff]  ;;  %v219_v62 = vld [vmem:[#allocation6 + $0x188] sm:$0xff]  ;;  %v221_v63 = vld [vmem:[#allocation6 + $0x198] sm:$0xff]  ;;  %v519_v1 = vpack.c.bf16 %v91_v56, %v89_v55 }
  0x46   :  { %536 = vmatprep.subr.bf16.mxu1 %v535_v46  ;;  %v88_v2 = vld [vmem:[#allocation6 + $0xc0] sm:$0xff]  ;;  %v90_v3 = vld [vmem:[#allocation6 + $0xd0] sm:$0xff]  ;;  %v93_v4 = vld [vmem:[#allocation6 + $0xe8] sm:$0xff]  ;;  %v541_v6 = vpack.c.bf16 %v216_v60, %v214_v59  ;;  %v543_v7 = vpack.c.bf16 %v221_v63, %v219_v62 }
  0x47   :  { %510 = vmatpush1.bf16.msra.mxu0 %v509_v32  ;;  %v95_v5 = vld [vmem:[#allocation6 + $0xf8] sm:$0xff]  ;;  %v218_v8 = vld [vmem:[#allocation6 + $0x180] sm:$0xff]  ;;  %v220_v9 = vld [vmem:[#allocation6 + $0x190] sm:$0xff]  ;;  %v521_v10 = vpack.c.bf16 %v90_v3, %v88_v2 }
  0x48   :  { %512 = vmatprep.subr.bf16.mxu0 %v511_v37  ;;  %v223_v11 = vld [vmem:[#allocation6 + $0x1a8] sm:$0xff]  ;;  %v225_v12 = vld [vmem:[#allocation6 + $0x1b8] sm:$0xff]  ;;  %v523_v13 = vpack.c.bf16 %v95_v5, %v93_v4  ;;  %v92_v14 = vld [vmem:[#allocation6 + $0xe0] sm:$0xff]  ;;  %v545_v16 = vpack.c.bf16 %v220_v9, %v218_v8 }
  0x49   :  { %538 = vmatpush1.bf16.msra.mxu1 %v537_v57  ;;  %v94_v15 = vld [vmem:[#allocation6 + $0xf0] sm:$0xff]  ;;  %v547_v17 = vpack.c.bf16 %v225_v12, %v223_v11  ;;  %v222_v18 = vld [vmem:[#allocation6 + $0x1a0] sm:$0xff]  ;;  %v227_v21 = vld [vmem:[#allocation6 + $0x1c8] sm:$0xff] }
  0x4a   :  { %540 = vmatprep.subr.bf16.mxu1 %v539_v58  ;;  %v224_v19 = vld [vmem:[#allocation6 + $0x1b0] sm:$0xff]  ;;  %v525_v20 = vpack.c.bf16 %v94_v15, %v92_v14  ;;  %v229_v22 = vld [vmem:[#allocation6 + $0x1d8] sm:$0xff]  ;;  %v226_v25 = vld [vmem:[#allocation6 + $0x1c0] sm:$0xff] }
  0x4b   :  { %514 = vmatpush1.bf16.msra.mxu0 %v513_v49  ;;  %v549_v23 = vpack.c.bf16 %v224_v19, %v222_v18  ;;  %v551_v24 = vpack.c.bf16 %v229_v22, %v227_v21  ;;  %v228_v26 = vld [vmem:[#allocation6 + $0x1d0] sm:$0xff]  ;;  %v231_v28 = vld [vmem:[#allocation6 + $0x1e8] sm:$0xff]  ;;  %v233_v29 = vld [vmem:[#allocation6 + $0x1f8] sm:$0xff] }
  0x4c   :  { %516 = vmatprep.subr.bf16.mxu0 %v515_v52  ;;  %v62_v27 = vld [vmem:[#allocation3] sm:$0xff]  ;;  %v553_v30 = vpack.c.bf16 %v228_v26, %v226_v25  ;;  %v555_v31 = vpack.c.bf16 %v233_v29, %v231_v28  ;;  %v230_v32 = vld [vmem:[#allocation6 + $0x1e0] sm:$0xff]  ;;  %v63_v34 = vld [vmem:[#allocation3 + $0x8] sm:$0xff] }
  0x4d   :  { %542 = vmatpush1.bf16.msra.mxu1 %v541_v6  ;;  %v232_v33 = vld [vmem:[#allocation6 + $0x1f0] sm:$0xff]  ;;  %v333_v36 = vld [vmem:[#allocation8 + $0x80] sm:$0xff]  ;;  %v334_v37 = vld [vmem:[#allocation8 + $0x88] sm:$0xff] }
  0x4e   :  { %544 = vmatprep.subr.bf16.mxu1 %v543_v7  ;;  %v557_v35 = vpack.c.bf16 %v232_v33, %v230_v32  ;;  %v559_v38 = vpack.c.bf16 %v334_v37, %v333_v36  ;;  %v317_v39 = vld [vmem:[#allocation8] sm:$0xff]  ;;  %v318_v40 = vld [vmem:[#allocation8 + $0x8] sm:$0xff]  ;;  %v335_v42 = vld [vmem:[#allocation8 + $0x90] sm:$0xff] }
  0x4f   :  { %518 = vmatpush1.bf16.msra.mxu0 %v517_v61  ;;  %v561_v41 = vpack.c.bf16 %v318_v40, %v317_v39  ;;  %v336_v43 = vld [vmem:[#allocation8 + $0x98] sm:$0xff]  ;;  %v319_v45 = vld [vmem:[#allocation8 + $0x10] sm:$0xff]  ;;  %v338_v48 = vld [vmem:[#allocation8 + $0xa8] sm:$0xff] }
  0x50   :  { %520 = vmatprep.subr.bf16.mxu0 %v519_v1  ;;  %v563_v44 = vpack.c.bf16 %v336_v43, %v335_v42  ;;  %v320_v46 = vld [vmem:[#allocation8 + $0x18] sm:$0xff]  ;;  %v321_v50 = vld [vmem:[#allocation8 + $0x20] sm:$0xff]  ;;  %v322_v51 = vld [vmem:[#allocation8 + $0x28] sm:$0xff] }
  0x51   :  { %546 = vmatpush1.bf16.msra.mxu1 %v545_v16  ;;  %v565_v47 = vpack.c.bf16 %v320_v46, %v319_v45  ;;  %v569_v52 = vpack.c.bf16 %v322_v51, %v321_v50  ;;  %v339_v53 = vld [vmem:[#allocation8 + $0xb0] sm:$0xff]  ;;  %v340_v54 = vld [vmem:[#allocation8 + $0xb8] sm:$0xff]  ;;  %v341_v59 = vld [vmem:[#allocation8 + $0xc0] sm:$0xff] }
  0x52   :  { %548 = vmatprep.subr.bf16.mxu1 %v547_v17  ;;  %v571_v55 = vpack.c.bf16 %v340_v54, %v339_v53  ;;  %v323_v56 = vld [vmem:[#allocation8 + $0x30] sm:$0xff]  ;;  %v324_v57 = vld [vmem:[#allocation8 + $0x38] sm:$0xff]  ;;  %v342_v60 = vld [vmem:[#allocation8 + $0xc8] sm:$0xff] }
  0x53   :  { %522 = vmatpush1.bf16.msra.mxu0 %v521_v10  ;;  %v573_v58 = vpack.c.bf16 %v324_v57, %v323_v56  ;;  %v575_v61 = vpack.c.bf16 %v342_v60, %v341_v59  ;;  %v325_v62 = vld [vmem:[#allocation8 + $0x40] sm:$0xff]  ;;  %v326_v63 = vld [vmem:[#allocation8 + $0x48] sm:$0xff]  ;;  %v343_v2 = vld [vmem:[#allocation8 + $0xd0] sm:$0xff] }
  0x54   :  { %524 = vmatprep.subr.bf16.mxu0 %v523_v13  ;;  %v577_v1 = vpack.c.bf16 %v326_v63, %v325_v62  ;;  %v344_v3 = vld [vmem:[#allocation8 + $0xd8] sm:$0xff]  ;;  %v327_v5 = vld [vmem:[#allocation8 + $0x50] sm:$0xff]  ;;  %v345_v8 = vld [vmem:[#allocation8 + $0xe0] sm:$0xff] }
  0x55   :  { %550 = vmatpush1.bf16.msra.mxu1 %v549_v23  ;;  %v579_v4 = vpack.c.bf16 %v344_v3, %v343_v2  ;;  %v328_v6 = vld [vmem:[#allocation8 + $0x58] sm:$0xff]  ;;  %v346_v9 = vld [vmem:[#allocation8 + $0xe8] sm:$0xff]  ;;  %v329_v11 = vld [vmem:[#allocation8 + $0x60] sm:$0xff] }
  0x56   :  { %552 = vmatprep.subr.bf16.mxu1 %v551_v24  ;;  %v581_v7 = vpack.c.bf16 %v328_v6, %v327_v5  ;;  %v583_v10 = vpack.c.bf16 %v346_v9, %v345_v8  ;;  %v330_v12 = vld [vmem:[#allocation8 + $0x68] sm:$0xff]  ;;  %v347_v14 = vld [vmem:[#allocation8 + $0xf0] sm:$0xff]  ;;  %v348_v15 = vld [vmem:[#allocation8 + $0xf8] sm:$0xff] }
  0x57   :  { %526 = vmatpush1.bf16.msra.mxu0 %v525_v20  ;;  %v585_v13 = vpack.c.bf16 %v330_v12, %v329_v11  ;;  %v587_v16 = vpack.c.bf16 %v348_v15, %v347_v14  ;;  %v331_v17 = vld [vmem:[#allocation8 + $0x70] sm:$0xff]  ;;  %v332_v18 = vld [vmem:[#allocation8 + $0x78] sm:$0xff] }
  0x58   :  { %560 = vmatprep.subr.bf16.mxu0 %v559_v38  ;;  %v589_v19 = vpack.c.bf16 %v332_v18, %v331_v17 }
  0x59   :  { %554 = vmatpush1.bf16.msra.mxu1 %v553_v30 }
  0x5a   :  { %161 = vmatmul.mubr.f32.vlgmr.msra.gmra.mrb[0].mxu0 %v62_v27  ;;  %556 = vmatprep.subr.bf16.mxu1 %v555_v31 }
  0x5b   :  { %166 = vmatprep.mubr.f32.mxu0 %v733_v0  ;;  %562 = vmatpush3.bf16.msra.mxu0 %v561_v41 }
  0x5c   :  { %564 = vmatprep.subr.bf16.mxu0 %v563_v44 }
  0x5d   :  { %558 = vmatpush1.bf16.msra.mxu1 %v557_v35 }
  0x5e   :  { %167 = vmatmul.mubr.f32.gmra.mrb[2].mxu0 %v63_v34  ;;  %591 = vmatprep.subr.bf16.mxu1 %v559_v38 }
  0x5f   :  { %566 = vmatpush3.bf16.msra.mxu0 %v565_v47 }
  0x60   :  { %299 = vmatmul.mubr.f32.vlgmr.msra.gmra.mrb[0].mxu1 %v62_v27 }
  0x61   :  { %304 = vmatprep.mubr.f32.mxu1 %v733_v0  ;;  %599 = vmatpush3.bf16.msra.mxu1 %v561_v41  ;;  %v337_v0 = vld [vmem:[#allocation8 + $0xa0] sm:$0xff] }
  0x62   :  { %592 = vmatprep.subr.bf16.mxu1 %v563_v44  ;;  %v567_v49 = vpack.c.bf16 %v338_v48, %v337_v0 }
  0x64   :  { %305 = vmatmul.mubr.f32.gmra.mrb[2].mxu1 %v63_v34  ;;  %568 = vmatprep.subr.bf16.mxu0 %v567_v49 }
  0x65   :  { %600 = vmatpush3.bf16.msra.mxu1 %v565_v47  ;;  %570 = vmatpush3.bf16.msra.mxu0 %v569_v52 }
  0x66   :  { %593 = vmatprep.subr.bf16.mxu1 %v567_v49  ;;  %572 = vmatprep.subr.bf16.mxu0 %v571_v55 }
  0x69   :  { %601 = vmatpush3.bf16.msra.mxu1 %v569_v52  ;;  %574 = vmatpush3.bf16.msra.mxu0 %v573_v58 }
  0x6a   :  { %594 = vmatprep.subr.bf16.mxu1 %v571_v55  ;;  %576 = vmatprep.subr.bf16.mxu0 %v575_v61 }
  0x6d   :  { %602 = vmatpush3.bf16.msra.mxu1 %v573_v58  ;;  %578 = vmatpush3.bf16.msra.mxu0 %v577_v1 }
  0x6e   :  { %595 = vmatprep.subr.bf16.mxu1 %v575_v61  ;;  %580 = vmatprep.subr.bf16.mxu0 %v579_v4 }
  0x71   :  { %603 = vmatpush3.bf16.msra.mxu1 %v577_v1  ;;  %582 = vmatpush3.bf16.msra.mxu0 %v581_v7 }
  0x72   :  { %596 = vmatprep.subr.bf16.mxu1 %v579_v4  ;;  %584 = vmatprep.subr.bf16.mxu0 %v583_v10 }
  0x75   :  { %604 = vmatpush3.bf16.msra.mxu1 %v581_v7  ;;  %586 = vmatpush3.bf16.msra.mxu0 %v585_v13 }
  0x76   :  { %597 = vmatprep.subr.bf16.mxu1 %v583_v10  ;;  %588 = vmatprep.subr.bf16.mxu0 %v587_v16 }
  0x79   :  { %605 = vmatpush3.bf16.msra.mxu1 %v585_v13  ;;  %590 = vmatpush3.bf16.msra.mxu0 %v589_v19 }
  0x7a   :  { %598 = vmatprep.subr.bf16.mxu1 %v587_v16 }
  0x7d   :  { %606 = vmatpush3.bf16.msra.mxu1 %v589_v19 }
 0x12d   :  { %v162_v20 = vpop.f32.mrb[0].mxu0 }
 0x12e   :  { %v453_v21 = vmul.f32 -1.442695, %v162_v20  ;;  %v164_v22 = vpop.f32.mrb[1].mxu0 }
 0x12f   :  { %v454_v23 = vmul.f32 -1.442695, %v164_v22 }
 0x130   :  { %616 = vpow2.f32 %v453_v21 }
 0x131   :  { %618 = vpow2.f32 %v454_v23  ;;  %v168_v24 = vpop.f32.mrb[2].mxu0 }
 0x132   :  { %v455_v25 = vmul.f32 -1.442695, %v168_v24  ;;  %v170_v26 = vpop.f32.mrb[3].mxu0 }
 0x133   :  { %v456_v27 = vmul.f32 -1.442695, %v170_v26  ;;  %v300_v28 = vpop.f32.mrb[0].mxu1 }
 0x134   :  { %620 = vpow2.f32 %v455_v25  ;;  %v302_v29 = vpop.f32.mrb[1].mxu1 }
 0x135   :  { %622 = vpow2.f32 %v456_v27 }
 0x137   :  { %v306_v33 = vpop.f32.mrb[2].mxu1 }
 0x138   :  { %v308_v35 = vpop.f32.mrb[3].mxu1 }
 0x13a   :  { %v617_v30 = vpop.eup %616 }
 0x13b   :  { %v619_v31 = vpop.eup %618  ;;  %v185_v32 = vadd.f32 1.0, %v617_v30 }
 0x13c   :  { %v186_v34 = vadd.f32 1.0, %v619_v31 }
 0x13d   :  { %624 = vrcp.f32 %v185_v32 }
 0x13e   :  { %v621_v36 = vpop.eup %620  ;;  %626 = vrcp.f32 %v186_v34 }
 0x13f   :  { %v623_v37 = vpop.eup %622  ;;  %v187_v38 = vadd.f32 1.0, %v621_v36 }
 0x140   :  { %v188_v39 = vadd.f32 1.0, %v623_v37 }
 0x141   :  { %628 = vrcp.f32 %v187_v38 }
 0x142   :  { %630 = vrcp.f32 %v188_v39 }
 0x147   :  { %v625_v40 = vpop.eup %624 }
 0x148   :  { %v627_v41 = vpop.eup %626  ;;  %v197_v42 = vmul.f32 %v625_v40, %v162_v20 }
 0x149   :  { %v198_v43 = vmul.f32 %v627_v41, %v164_v22 }
 0x14a   :  { %v311_v44 = vmul.f32 %v300_v28, %v197_v42 }
 0x14b   :  { %v629_v45 = vpop.eup %628  ;;  %v312_v46 = vmul.f32 %v302_v29, %v198_v43 }
 0x14c   :  { %v631_v47 = vpop.eup %630  ;;  %v199_v0 = vmul.f32 %v629_v45, %v168_v24 }
 0x14d   :  { %v200_v48 = vmul.f32 %v631_v47, %v170_v26  ;;  %413 = vmatprep.mubr.f32.mxu0 %v312_v46 }
 0x14e   :  { %v313_v49 = vmul.f32 %v306_v33, %v199_v0  ;;  %414 = vmatmul.mubr.f32.vlgmr.msra.gmra.mrb[4].mxu0 %v311_v44 }
 0x14f   :  { %v314_v50 = vmul.f32 %v308_v35, %v200_v48 }
 0x151   :  { %418 = vmatprep.mubr.f32.mxu1 %v314_v50 }
 0x152   :  { %419 = vmatmul.mubr.f32.vlgmr.msra.gmra.mrb[4].mxu1 %v313_v49 }
 0x221   :  { %v489_v51 = vpop.f32.mrb[4].mxu0 }
 0x222   :  { %v490_v52 = vpop.f32.mrb[5].mxu0 }
 0x223   :  { %v491_v53 = vadd.f32 %v490_v52, %v489_v51 }
 0x225   :  { %433 = vst [vmem:[#allocation9] sm:$0xff] %v491_v53  ;;  %v492_v54 = vpop.f32.mrb[4].mxu1 }
 0x226   :  { %v493_v55 = vpop.f32.mrb[5].mxu1 }
 0x227   :  { %v494_v56 = vadd.f32 %v493_v55, %v492_v54 }
 0x229   :  { %434 = vst [vmem:[#allocation9 + $0x8] sm:$0xff] %v494_v56 }
 0x22a   :  { %709 = shalt.err (!%p706_p0)
}
 0x22b   :  { %s710_s27 = scalar_lea.hbm %s819_s3, 256 }
 0x22c   :  { %p711_p1 = scmp.ne.s32.totalorder %s819_s3, %s710_s27  ;;  %p714_p2 = scmp.lt.u32.totalorder %s710_s27, %s819_s3 }
 0x22e   :  { %p716_p3 = pnand %p714_p2, %p711_p1 }
 0x230   :  { %719 = shalt.err (!%p716_p3)
}
 0x231   :  { %446 = dma.vmem_to_hbm [thread:$0]  %s441_s23, 256, %s819_s3, [#allocation5], %s730_s1, %s730_s1, %s731_s9  }
 0x232   :  { %724 = dma.done.wait [#allocation5], 256  }
 0x233   :  { %725 = vsyncadd [#allocation5], 4294967040 }
 0x234   :  { %450 = vsyncpa [#allocation4], 1 }
 0x235   :  { %451 = vsyncpa [#allocation7], 1 }
 0x236   :  { %452 = vsyncpa [#allocation5], 1 }

</bundles_post_ra>
